<compile_context>
chip_gen: v7x
topology: tpu7x:2x2x1
jax: 0.10.0
libtpu: 0.0.40
codegen_flags: <defaults>
</compile_context>

<pallas_src>
import functools

import jax
import jax.numpy as jnp
from jax.experimental import pallas as pl
from jax.experimental.pallas import tpu as pltpu

IN_FEATURES = 768
HIDDEN = 128
OUT_FEATURES = 6
OUT_PAD = 128          # lane-dense padded output width
DEFAULT_TB = 256       # batch tile (multiple of 8)


def _round_up(n, m):
    return ((n + m - 1) // m) * m


def _loc_net_kernel(x_ref, w1_ref, b1_ref, w2_ref, b2_ref, o_ref):
    # Hidden layer: (TB, 768) @ (768, 128) on the MXU (bf16 in, f32 acc),
    # + b1, ReLU.  x is f32 in VMEM; cast to bf16 on the VPU (cheap, the
    # kernel is HBM-bound on the x stream anyway).
    x_bf = x_ref[...].astype(jnp.bfloat16)
    h = jnp.dot(x_bf, w1_ref[...], preferred_element_type=jnp.float32)
    h = jnp.maximum(h + b1_ref[...], 0.0)          # b1 is (1, 128), broadcasts
    # Output layer: (TB, 128) @ (128, 128_pad) -> f32 acc, + b2.
    o = jnp.dot(h.astype(jnp.bfloat16), w2_ref[...],
                preferred_element_type=jnp.float32)
    o_ref[...] = o + b2_ref[...]                   # b2 is (1, 128_pad)


def prepare_params(w1, b1, w2, b2):
    """One-time parameter prep: bf16 cast + lane-dense padding of layer 2."""
    w1_bf = jnp.asarray(w1).astype(jnp.bfloat16)                       # (768, 128)
    b1_p = jnp.asarray(b1, jnp.float32).reshape(1, HIDDEN)             # (1, 128)
    w2_p = jnp.zeros((HIDDEN, OUT_PAD), jnp.bfloat16)                  # (128, 128)
    w2_p = w2_p.at[:, :OUT_FEATURES].set(jnp.asarray(w2).astype(jnp.bfloat16))
    b2_p = jnp.zeros((1, OUT_PAD), jnp.float32)                        # (1, 128)
    b2_p = b2_p.at[0, :OUT_FEATURES].set(jnp.asarray(b2, jnp.float32))
    return w1_bf, b1_p, w2_p, b2_p


@functools.partial(jax.jit, static_argnames=("tb",))
def loc_net_forward(x, params, *, tb=DEFAULT_TB):
    """x: (B, 768) f32 -> A_theta: (B, 2, 3) f32."""
    w1_bf, b1_p, w2_p, b2_p = params
    B = x.shape[0]

    # Batch tile: multiple of 8 sublanes, no larger than the (padded) batch.
    b8 = _round_up(B, 8)
    TB = min(tb, b8)
    B_pad = _round_up(B, TB)
    grid = (B_pad // TB,)

    x_in = x.astype(jnp.float32)
    if B_pad != B:
        x_in = jnp.pad(x_in, ((0, B_pad - B), (0, 0)))

    # Rough cost model: 2 matmuls + HBM bytes for x (f32), W1/W2 (bf16), out (f32).
    flops = 2 * B_pad * IN_FEATURES * HIDDEN + 2 * B_pad * HIDDEN * OUT_PAD
    bytes_accessed = (4 * B_pad * IN_FEATURES        # x f32
                      + 2 * IN_FEATURES * HIDDEN     # W1 bf16
                      + 2 * HIDDEN * OUT_PAD         # W2 bf16
                      + 4 * B_pad * OUT_PAD          # out f32
                      + 4 * (HIDDEN + OUT_PAD))      # biases f32

    out_padded = pl.pallas_call(
        _loc_net_kernel,
        out_shape=jax.ShapeDtypeStruct((B_pad, OUT_PAD), jnp.float32),
        grid=grid,
        in_specs=[
            pl.BlockSpec((TB, IN_FEATURES), lambda i: (i, 0)),          # x tile
            pl.BlockSpec((IN_FEATURES, HIDDEN), lambda i: (0, 0)),      # W1 resident
            pl.BlockSpec((1, HIDDEN), lambda i: (0, 0)),                # b1 resident
            pl.BlockSpec((HIDDEN, OUT_PAD), lambda i: (0, 0)),          # W2 resident
            pl.BlockSpec((1, OUT_PAD), lambda i: (0, 0)),               # b2 resident
        ],
        out_specs=pl.BlockSpec((TB, OUT_PAD), lambda i: (i, 0)),
        compiler_params=pltpu.CompilerParams(
            dimension_semantics=("parallel",),
        ),
        cost_estimate=pl.CostEstimate(
            flops=flops, transcendentals=0, bytes_accessed=bytes_accessed),
    )(x_in, w1_bf, b1_p, w2_p, b2_p)

    a_theta = out_padded[:B, :OUT_FEATURES].reshape(-1, 2, 3)
    return a_theta


def init_params(key):
    """Deterministic init mirroring the PyTorch module's __init__."""
    k1, k2 = jax.random.split(key)
    # Layer 1: PyTorch default-style uniform init in [-1/sqrt(fan_in), 1/sqrt(fan_in)]
    bound1 = 1.0 / jnp.sqrt(jnp.float32(IN_FEATURES))
    w1 = jax.random.uniform(k1, (IN_FEATURES, HIDDEN), jnp.float32,
                            minval=-bound1, maxval=bound1)
    b1 = jax.random.uniform(k2, (HIDDEN,), jnp.float32,
                            minval=-bound1, maxval=bound1)
    # Layer 2: weight zeroed, bias = identity affine transform (as in __init__)
    w2 = jnp.zeros((HIDDEN, OUT_FEATURES), jnp.float32)
    b2 = jnp.array([1.0, 0.0, 0.0, 0.0, 1.0, 0.0], jnp.float32)
    return w1, b1, w2, b2


if __name__ == "__main__":
    key = jax.random.PRNGKey(0)
    kx, kp, kw, kb = jax.random.split(key, 4)

    B = 8
    x = jax.random.normal(kx, (B, IN_FEATURES), jnp.float32)
    w1, b1, w2, b2 = init_params(kp)

    # --- Test 1: module-default init (zero W2, identity-affine bias). ---
    params = prepare_params(w1, b1, w2, b2)
    a_theta = jax.block_until_ready(loc_net_forward(x, params))
    ref = jnp.broadcast_to(b2.reshape(1, 2, 3), (B, 2, 3))  # W2=0 -> output is bias
    assert a_theta.shape == (B, 2, 3)
    assert jnp.allclose(a_theta, ref, atol=1e-6, rtol=1e-6)

    # --- Test 2: non-zero W2 to exercise both matmuls (bf16-consistent ref). ---
    w2r = 0.05 * jax.random.normal(kw, (HIDDEN, OUT_FEATURES), jnp.float32)
    b2r = 0.05 * jax.random.normal(kb, (OUT_FEATURES,), jnp.float32)
    params_r = prepare_params(w1, b1, w2r, b2r)
    out_r = jax.block_until_ready(loc_net_forward(x, params_r))

    xb = x.astype(jnp.bfloat16)
    w1b = w1.astype(jnp.bfloat16)
    h_ref = jnp.maximum(
        jnp.dot(xb, w1b, preferred_element_type=jnp.float32) + b1, 0.0)
    ref_r = (jnp.dot(h_ref.astype(jnp.bfloat16), w2r.astype(jnp.bfloat16),
                     preferred_element_type=jnp.float32) + b2r).reshape(-1, 2, 3)
    assert out_r.shape == (B, 2, 3)
    assert jnp.allclose(out_r, ref_r, atol=2e-2, rtol=2e-2)

    print("KERNEL_OK")
</pallas_src>

<mosaic_0001>
module attributes {stable_mosaic.version = 11 : i64} {
  func.func @_loc_net_kernel(%arg0: i32, %arg1: memref<8x768xf32, #tpu.memory_space<vmem>>, %arg2: memref<768x128xbf16, #tpu.memory_space<vmem>>, %arg3: memref<1x128xf32, #tpu.memory_space<vmem>>, %arg4: memref<128x128xbf16, #tpu.memory_space<vmem>>, %arg5: memref<1x128xf32, #tpu.memory_space<vmem>>, %arg6: memref<8x128xf32, #tpu.memory_space<vmem>>) attributes {dimension_semantics = [#tpu.dimension_semantics<parallel>], iteration_bounds = array<i64: 1>, scalar_prefetch = 0 : i64, scratch_operands = 0 : i64, tpu.core_type = #tpu.core_type<tc>, window_params = [{transform_indices = @transform_0, window_bounds = array<i64: 8, 768>}, {pipeline_mode = #tpu.pipeline_mode<synchronous>, transform_indices = @transform_1, window_bounds = array<i64: 768, 128>}, {pipeline_mode = #tpu.pipeline_mode<synchronous>, transform_indices = @transform_2, window_bounds = array<i64: 1, 128>}, {pipeline_mode = #tpu.pipeline_mode<synchronous>, transform_indices = @transform_3, window_bounds = array<i64: 128, 128>}, {pipeline_mode = #tpu.pipeline_mode<synchronous>, transform_indices = @transform_4, window_bounds = array<i64: 1, 128>}, {transform_indices = @transform_5, window_bounds = array<i64: 8, 128>}]} {
    %c0 = arith.constant 0 : index
    %c0_0 = arith.constant 0 : index
    %0 = vector.load %arg1[%c0, %c0_0] : memref<8x768xf32, #tpu.memory_space<vmem>>, vector<8x768xf32>
    %1 = arith.truncf %0 : vector<8x768xf32> to vector<8x768xbf16>
    %c0_1 = arith.constant 0 : index
    %c0_2 = arith.constant 0 : index
    %2 = vector.load %arg2[%c0_1, %c0_2] : memref<768x128xbf16, #tpu.memory_space<vmem>>, vector<768x128xbf16>
    %cst = arith.constant dense<0.000000e+00> : vector<8x128xf32>
    %3 = tpu.matmul %1, %2, %cst {dimension_numbers = #tpu.dot_dimension_numbers<[1], [0], [0], [1], [0, 0, 1, 1], [], []>} : vector<8x768xbf16>, vector<768x128xbf16>, vector<8x128xf32> -> vector<8x128xf32>
    %c0_3 = arith.constant 0 : index
    %c0_4 = arith.constant 0 : index
    %4 = vector.load %arg3[%c0_3, %c0_4] : memref<1x128xf32, #tpu.memory_space<vmem>>, vector<1x128xf32>
    %5 = vector.broadcast %4 : vector<1x128xf32> to vector<8x128xf32>
    %6 = arith.addf %3, %5 : vector<8x128xf32>
    %cst_5 = arith.constant 0.000000e+00 : f32
    %7 = vector.broadcast %cst_5 : f32 to vector<8x128xf32>
    %8 = arith.maximumf %6, %7 : vector<8x128xf32>
    %9 = arith.truncf %8 : vector<8x128xf32> to vector<8x128xbf16>
    %c0_6 = arith.constant 0 : index
    %c0_7 = arith.constant 0 : index
    %10 = vector.load %arg4[%c0_6, %c0_7] : memref<128x128xbf16, #tpu.memory_space<vmem>>, vector<128x128xbf16>
    %cst_8 = arith.constant dense<0.000000e+00> : vector<8x128xf32>
    %11 = tpu.matmul %9, %10, %cst_8 {dimension_numbers = #tpu.dot_dimension_numbers<[1], [0], [0], [1], [0, 0, 1, 1], [], []>} : vector<8x128xbf16>, vector<128x128xbf16>, vector<8x128xf32> -> vector<8x128xf32>
    %c0_9 = arith.constant 0 : index
    %c0_10 = arith.constant 0 : index
    %12 = vector.load %arg5[%c0_9, %c0_10] : memref<1x128xf32, #tpu.memory_space<vmem>>, vector<1x128xf32>
    %13 = vector.broadcast %12 : vector<1x128xf32> to vector<8x128xf32>
    %14 = arith.addf %11, %13 : vector<8x128xf32>
    %c0_11 = arith.constant 0 : index
    %c0_12 = arith.constant 0 : index
    %15 = vector.load %arg6[%c0_11, %c0_12] : memref<8x128xf32, #tpu.memory_space<vmem>>, vector<8x128xf32>
    tpu.vector_store %arg6[%c0_11, %c0_12], %14 {strides = array<i32>} : memref<8x128xf32, #tpu.memory_space<vmem>>, vector<8x128xf32>,
    return
  }
  func.func @transform_0(%arg0: i32) -> (i32, i32) {
    %c0_i32 = arith.constant 0 : i32
    %c0_i32_0 = arith.constant 0 : i32
    return %arg0, %c0_i32 : i32, i32
  }
  func.func @transform_1(%arg0: i32) -> (i32, i32) {
    %c0_i32 = arith.constant 0 : i32
    %c0_i32_0 = arith.constant 0 : i32
    %c0_i32_1 = arith.constant 0 : i32
    return %c0_i32, %c0_i32_0 : i32, i32
  }
  func.func @transform_2(%arg0: i32) -> (i32, i32) {
    %c0_i32 = arith.constant 0 : i32
    %c0_i32_0 = arith.constant 0 : i32
    %c0_i32_1 = arith.constant 0 : i32
    return %c0_i32, %c0_i32_0 : i32, i32
  }
  func.func @transform_3(%arg0: i32) -> (i32, i32) {
    %c0_i32 = arith.constant 0 : i32
    %c0_i32_0 = arith.constant 0 : i32
    %c0_i32_1 = arith.constant 0 : i32
    return %c0_i32, %c0_i32_0 : i32, i32
  }
  func.func @transform_4(%arg0: i32) -> (i32, i32) {
    %c0_i32 = arith.constant 0 : i32
    %c0_i32_0 = arith.constant 0 : i32
    %c0_i32_1 = arith.constant 0 : i32
    return %c0_i32, %c0_i32_0 : i32, i32
  }
  func.func @transform_5(%arg0: i32) -> (i32, i32) {
    %c0_i32 = arith.constant 0 : i32
    %c0_i32_0 = arith.constant 0 : i32
    return %arg0, %c0_i32 : i32, i32
  }
}

</mosaic_0001>

<bundles_post_ra>
// kernel: loc_net_forward.1
= control target key start
LH: loop header
LB: loop body
LE: loop exit
PB: predicated region body
PF: predicated region fallthrough
CT: control target
= control target key end

     0   :  { %10 = vsyncpa [#allocation3], 0  ;;  %s1077_s0 = inlined_call_operand.hbm [shape: f32[8,768], index: 0, kind: input, shape index: {}]   ;;  %s1078_s1 = inlined_call_operand.hbm [shape: bf16[768,128], index: 1, kind: input, shape index: {}]   ;;  %s1079_s2 = inlined_call_operand.vmem [shape: f32[1,128], index: 2, kind: input, shape index: {}]   ;;  %s1080_s3 = inlined_call_operand.hbm [shape: bf16[128,128], index: 3, kind: input, shape index: {}]   ;;  %s1081_s4 = inlined_call_operand.vmem [shape: f32[1,128], index: 4, kind: input, shape index: {}]   ;;  %s1082_s5 = inlined_call_operand.vmem [shape: f32[8,128], index: 5, kind: output, shape index: {}]  }
   0x1   :  { %11 = vsyncpa [#allocation5], 0  ;;  %s989_s18 = smov [#allocation4]   ;;  %s919_s22 = scalar_lea.hbm %s1078_s1, 6144 }
   0x2   :  { %s27_s19 = sshll.u32 %s989_s18, 4  ;;  %p920_p0 = scmp.ne.s32.totalorder %s1078_s1, %s919_s22  ;;  %s28_s19 = int_to_ptr.vmem [resolvable:$true] %s27_s19 }
   0x3   :  { %p923_p1 = scmp.lt.u32.totalorder %s919_s22, %s1078_s1 }
   0x5   :  { %p925_p2 = pnand %p923_p1, %p920_p0 }
   0x7   :  { %928 = shalt.err (!%p925_p2)
}
   0x8   :  { %s929_s27 = scalar_lea.vmem %s28_s19, 6144  ;;  %p934_p4 = scmp.lt.s32.totalorder %s28_s19, %s28_s19 }
   0x9   :  { %p930_p3 = scmp.ne.s32.totalorder %s28_s19, %s929_s27  ;;  %p935_p5 = scmp.lt.s32.totalorder %s929_s27, %s929_s27 }
   0xb   :  { %p936_p6 = por %p935_p5, %p934_p4 }
   0xd   :  { %p937_p7 = pnand %p936_p6, %p930_p3 }
   0xf   :  { %940 = shalt.err (!%p937_p7)
}
  0x10   :  { %s990_s28 = smov 64   ;;  %s991_s29 = smov 4  }
  0x11   :  { %33 = dma.hbm_to_vmem [thread:$0]  %s1078_s1, 6144, %s28_s19, [#allocation5], %s990_s28, %s990_s28, %s991_s29  }
  0x12   :  { %s992_s7 = smov [#allocation2]   ;;  %s993_s9 = smov [#allocation6]  }
  0x13   :  { %s18_s8 = sshll.u32 %s992_s7, 4  ;;  %s41_s10 = sshll.u32 %s993_s9, 4  ;;  %s19_s8 = int_to_ptr.vmem [resolvable:$true] %s18_s8  ;;  %s42_s10 = int_to_ptr.vmem [resolvable:$true] %s41_s10 }
  0x14   :  { %s941_s13 = scalar_lea.hbm %s1077_s0, 768 }
  0x15   :  { %p942_p8 = scmp.ne.s32.totalorder %s1077_s0, %s941_s13  ;;  %p945_p9 = scmp.lt.u32.totalorder %s941_s13, %s1077_s0 }
  0x17   :  { %p947_p10 = pnand %p945_p9, %p942_p8 }
  0x19   :  { %950 = shalt.err (!%p947_p10)
}
  0x1a   :  { %s951_s1 = scalar_lea.vmem %s19_s8, 768  ;;  %p956_p12 = scmp.lt.s32.totalorder %s19_s8, %s19_s8 }
  0x1b   :  { %p952_p11 = scmp.ne.s32.totalorder %s19_s8, %s951_s1  ;;  %p957_p13 = scmp.lt.s32.totalorder %s951_s1, %s951_s1 }
  0x1d   :  { %p958_p0 = por %p957_p13, %p956_p12 }
  0x1f   :  { %p959_p1 = pnand %p958_p0, %p952_p11 }
  0x21   :  { %962 = shalt.err (!%p959_p1)
}
  0x22   :  { %21 = dma.hbm_to_vmem [thread:$0]  %s1077_s0, 768, %s19_s8, [#allocation3]  }
  0x23   :  { %s963_s22 = scalar_lea.hbm %s1080_s3, 1024 }
  0x24   :  { %p964_p2 = scmp.ne.s32.totalorder %s1080_s3, %s963_s22  ;;  %p967_p3 = scmp.lt.u32.totalorder %s963_s22, %s1080_s3 }
  0x26   :  { %p969_p4 = pnand %p967_p3, %p964_p2 }
  0x28   :  { %972 = shalt.err (!%p969_p4)
}
  0x29   :  { %s973_s27 = scalar_lea.vmem %s42_s10, 1024  ;;  %p978_p6 = scmp.lt.s32.totalorder %s42_s10, %s42_s10 }
  0x2a   :  { %p974_p5 = scmp.ne.s32.totalorder %s42_s10, %s973_s27  ;;  %p979_p7 = scmp.lt.s32.totalorder %s973_s27, %s973_s27 }
  0x2c   :  { %p980_p8 = por %p979_p7, %p978_p6 }
  0x2e   :  { %p981_p9 = pnand %p980_p8, %p974_p5 }
  0x30   :  { %984 = shalt.err (!%p981_p9)
}
  0x31   :  { %47 = dma.hbm_to_vmem [thread:$0]  %s1080_s3, 1024, %s42_s10, [#allocation5], %s990_s28, %s990_s28, %s991_s29  }
  0x32   :  { %985 = dma.done.wait [#allocation3], 768  }
  0x33   :  { %986 = vsyncadd [#allocation3], 4294966528 }
  0x34   :  { %987 = dma.done.wait [#allocation5], 7168  }
  0x35   :  { %988 = vsyncadd [#allocation5], 4294960128  ;;  %v863_v0 = vld [vmem:[#allocation4 + $0x40] sm:$0xff]   ;;  %v867_v4 = vld [vmem:[#allocation4 + $0x48] sm:$0xff]   ;;  %v994_v61 = vmov 0.0   ;;  %vm995_vm0 = vmmov 0  }
  0x36   :  { %v864_v1 = vld [vmem:[#allocation4] sm:$0xff]   ;;  %761 = vmatprep.subr.bf16.mxu0 %v863_v0  ;;  %v868_v5 = vld [vmem:[#allocation4 + $0x8] sm:$0xff]   ;;  %v871_v8 = vld [vmem:[#allocation4 + $0x50] sm:$0xff]  }
  0x37   :  { %v865_v2 = vld [vmem:[#allocation4 + $0xc0] sm:$0xff]   ;;  %762 = vmatpush3.bf16.msra.mxu0 %v864_v1  ;;  %v869_v6 = vld [vmem:[#allocation4 + $0xc8] sm:$0xff]   ;;  %v872_v9 = vld [vmem:[#allocation4 + $0x10] sm:$0xff]  }
  0x38   :  { %v866_v3 = vld [vmem:[#allocation4 + $0x80] sm:$0xff]   ;;  %783 = vmatprep.subr.bf16.mxu1 %v865_v2  ;;  %763 = vmatprep.subr.bf16.mxu0 %v867_v4  ;;  %v870_v7 = vld [vmem:[#allocation4 + $0x88] sm:$0xff]   ;;  %v873_v10 = vld [vmem:[#allocation4 + $0xd0] sm:$0xff]  }
  0x39   :  { %784 = vmatpush3.bf16.msra.mxu1 %v866_v3  ;;  %v874_v11 = vld [vmem:[#allocation4 + $0x90] sm:$0xff]   ;;  %v875_v12 = vld [vmem:[#allocation4 + $0x58] sm:$0xff]   ;;  %v879_v16 = vld [vmem:[#allocation4 + $0x60] sm:$0xff]  }
  0x3a   :  { %785 = vmatprep.subr.bf16.mxu1 %v869_v6  ;;  %v876_v13 = vld [vmem:[#allocation4 + $0x18] sm:$0xff]   ;;  %v880_v17 = vld [vmem:[#allocation4 + $0x20] sm:$0xff]   ;;  %v883_v20 = vld [vmem:[#allocation4 + $0x68] sm:$0xff]  }
  0x3b   :  { %764 = vmatpush3.bf16.msra.mxu0 %v868_v5  ;;  %v877_v14 = vld [vmem:[#allocation4 + $0xd8] sm:$0xff]   ;;  %v881_v18 = vld [vmem:[#allocation4 + $0xe0] sm:$0xff]   ;;  %v884_v21 = vld [vmem:[#allocation4 + $0x28] sm:$0xff]  }
  0x3c   :  { %765 = vmatprep.subr.bf16.mxu0 %v871_v8  ;;  %v878_v15 = vld [vmem:[#allocation4 + $0x98] sm:$0xff]   ;;  %v882_v19 = vld [vmem:[#allocation4 + $0xa0] sm:$0xff]   ;;  %v885_v22 = vld [vmem:[#allocation4 + $0xe8] sm:$0xff]  }
  0x3d   :  { %786 = vmatpush3.bf16.msra.mxu1 %v870_v7  ;;  %v886_v23 = vld [vmem:[#allocation4 + $0xa8] sm:$0xff]   ;;  %v887_v24 = vld [vmem:[#allocation4 + $0x70] sm:$0xff]   ;;  %v891_v28 = vld [vmem:[#allocation4 + $0x78] sm:$0xff]  }
  0x3e   :  { %787 = vmatprep.subr.bf16.mxu1 %v873_v10  ;;  %v888_v25 = vld [vmem:[#allocation4 + $0x30] sm:$0xff]   ;;  %v892_v29 = vld [vmem:[#allocation4 + $0x38] sm:$0xff]   ;;  %v895_v36 = vld [vmem:[#allocation4 + $0x140] sm:$0xff]  }
  0x3f   :  { %766 = vmatpush3.bf16.msra.mxu0 %v872_v9  ;;  %v889_v26 = vld [vmem:[#allocation4 + $0xf0] sm:$0xff]   ;;  %v893_v30 = vld [vmem:[#allocation4 + $0xf8] sm:$0xff]   ;;  %v63_v37 = vld [vmem:[#allocation2 + $0x18] sm:$0xff] }
  0x40   :  { %767 = vmatprep.subr.bf16.mxu0 %v875_v12  ;;  %v890_v27 = vld [vmem:[#allocation4 + $0xb0] sm:$0xff]   ;;  %v61_v31 = vld [vmem:[#allocation2 + $0x8] sm:$0xff]  ;;  %v69_v38 = vpack.c.bf16 %v63_v37, %v63_v37  ;;  %v896_v39 = vld [vmem:[#allocation4 + $0x100] sm:$0xff]  }
  0x41   :  { %788 = vmatpush3.bf16.msra.mxu1 %v874_v11  ;;  %v67_v32 = vpack.c.bf16 %v61_v31, %v61_v31  ;;  %v894_v33 = vld [vmem:[#allocation4 + $0xb8] sm:$0xff]   ;;  %v60_v34 = vld [vmem:[#allocation2] sm:$0xff]  ;;  %v62_v40 = vld [vmem:[#allocation2 + $0x10] sm:$0xff] }
  0x42   :  { %789 = vmatprep.subr.bf16.mxu1 %v877_v14  ;;  %v66_v35 = vpack.c.bf16 %v60_v34, %v60_v34  ;;  %535 = vmatprep.mubr.bf16.mxu1 %v69_v38  ;;  %v68_v41 = vpack.c.bf16 %v62_v40, %v62_v40  ;;  %v897_v42 = vld [vmem:[#allocation4 + $0x148] sm:$0xff]   ;;  %v899_v44 = vld [vmem:[#allocation4 + $0x150] sm:$0xff]   ;;  %v901_v46 = vld [vmem:[#allocation4 + $0x158] sm:$0xff]  }
  0x43   :  { %768 = vmatpush3.bf16.msra.mxu0 %v876_v13  ;;  %495 = vmatprep.mubr.bf16.mxu0 %v67_v32  ;;  %v898_v43 = vld [vmem:[#allocation4 + $0x108] sm:$0xff]   ;;  %v900_v45 = vld [vmem:[#allocation4 + $0x110] sm:$0xff]   ;;  %v902_v47 = vld [vmem:[#allocation4 + $0x118] sm:$0xff]  }
  0x44   :  { %769 = vmatprep.subr.bf16.mxu0 %v879_v16  ;;  %v903_v48 = vld [vmem:[#allocation4 + $0x160] sm:$0xff]   ;;  %v905_v50 = vld [vmem:[#allocation4 + $0x168] sm:$0xff]   ;;  %v65_v51 = vld [vmem:[#allocation2 + $0x28] sm:$0xff] }
  0x45   :  { %790 = vmatpush3.bf16.msra.mxu1 %v878_v15  ;;  %v904_v49 = vld [vmem:[#allocation4 + $0x120] sm:$0xff]   ;;  %v906_v52 = vld [vmem:[#allocation4 + $0x128] sm:$0xff]   ;;  %v71_v53 = vpack.c.bf16 %v65_v51, %v65_v51  ;;  %v907_v54 = vld [vmem:[#allocation4 + $0x170] sm:$0xff]  }
  0x46   :  { %791 = vmatprep.subr.bf16.mxu1 %v881_v18  ;;  %v908_v55 = vld [vmem:[#allocation4 + $0x130] sm:$0xff]   ;;  %v909_v56 = vld [vmem:[#allocation4 + $0x178] sm:$0xff]   ;;  %v911_v60 = vld [vmem:[#allocation6] sm:$0xff]  }
  0x47   :  { %770 = vmatpush3.bf16.msra.mxu0 %v880_v17  ;;  %v910_v57 = vld [vmem:[#allocation4 + $0x138] sm:$0xff]   ;;  %v64_v58 = vld [vmem:[#allocation2 + $0x20] sm:$0xff]  ;;  %v912_v62 = vld [vmem:[#allocation6 + $0x8] sm:$0xff]  }
  0x48   :  { %771 = vmatprep.subr.bf16.mxu0 %v883_v20  ;;  %v70_v59 = vpack.c.bf16 %v64_v58, %v64_v58  ;;  %v913_v63 = vld [vmem:[#allocation6 + $0x10] sm:$0xff]   ;;  %v914_v0 = vld [vmem:[#allocation6 + $0x18] sm:$0xff]   ;;  %v915_v1 = vld [vmem:[#allocation6 + $0x20] sm:$0xff]  }
  0x49   :  { %792 = vmatpush3.bf16.msra.mxu1 %v882_v19  ;;  %v916_v2 = vld [vmem:[#allocation6 + $0x28] sm:$0xff]   ;;  %v917_v3 = vld [vmem:[#allocation6 + $0x30] sm:$0xff]   ;;  %v918_v4 = vld [vmem:[#allocation6 + $0x38] sm:$0xff]  }
  0x4a   :  { %793 = vmatprep.subr.bf16.mxu1 %v885_v22  ;;  %v703_v6 = vld [vmem:[%s1079_s2] ss:$0 sm:$0xff] }
  0x4b   :  { %772 = vmatpush3.bf16.msra.mxu0 %v884_v21 }
  0x4c   :  { %773 = vmatprep.subr.bf16.mxu0 %v887_v24 }
  0x4d   :  { %794 = vmatpush3.bf16.msra.mxu1 %v886_v23 }
  0x4e   :  { %795 = vmatprep.subr.bf16.mxu1 %v889_v26  ;;  %v752_v26 = vld [vmem:[%s1081_s4] ss:$0 sm:$0xff] }
  0x4f   :  { %774 = vmatpush3.bf16.msra.mxu0 %v888_v25 }
  0x50   :  { %775 = vmatprep.subr.bf16.mxu0 %v891_v28 }
  0x51   :  { %796 = vmatpush3.bf16.msra.mxu1 %v890_v27 }
  0x52   :  { %797 = vmatprep.subr.bf16.mxu1 %v893_v30 }
  0x53   :  { %776 = vmatpush3.bf16.msra.mxu0 %v892_v29 }
  0x54   :  { %805 = vmatprep.subr.bf16.mxu0 %v895_v36 }
  0x55   :  { %798 = vmatpush3.bf16.msra.mxu1 %v894_v33 }
  0x56   :  { %496 = vmatmul.mubr.bf16.vlgmr.msra.gmra.mrb[0].mxu0 %v66_v35  ;;  %836 = vmatprep.subr.bf16.mxu1 %v994_v61 }
  0x57   :  { %806 = vmatpush3.bf16.msra.mxu0 %v896_v39  ;;  %575 = vmatprep.mubr.bf16.mxu0 %v71_v53 }
  0x58   :  { %536 = vmatmul.mubr.bf16.vlgmr.msra.gmra.mrb[0].mxu1 %v68_v41  ;;  %807 = vmatprep.subr.bf16.mxu0 %v897_v42 }
  0x59   :  { %837 = vmatpush3.bf16.msra.mxu1 %v911_v60  ;;  %852 = vmatprep.mubr.msk.bf16.mxu1 %vm995_vm0, %v994_v61 }
  0x5a   :  { %838 = vmatprep.subr.bf16.mxu1 %v994_v61 }
  0x5b   :  { %808 = vmatpush3.bf16.msra.mxu0 %v898_v43 }
  0x5c   :  { %809 = vmatprep.subr.bf16.mxu0 %v899_v44 }
  0x5d   :  { %839 = vmatpush3.bf16.msra.mxu1 %v912_v62 }
  0x5e   :  { %840 = vmatprep.subr.bf16.mxu1 %v994_v61 }
  0x5f   :  { %810 = vmatpush3.bf16.msra.mxu0 %v900_v45 }
  0x60   :  { %811 = vmatprep.subr.bf16.mxu0 %v901_v46 }
  0x61   :  { %841 = vmatpush3.bf16.msra.mxu1 %v913_v63 }
  0x62   :  { %842 = vmatprep.subr.bf16.mxu1 %v994_v61 }
  0x63   :  { %812 = vmatpush3.bf16.msra.mxu0 %v902_v47 }
  0x64   :  { %813 = vmatprep.subr.bf16.mxu0 %v903_v48 }
  0x65   :  { %843 = vmatpush3.bf16.msra.mxu1 %v914_v0 }
  0x66   :  { %844 = vmatprep.subr.bf16.mxu1 %v994_v61 }
  0x67   :  { %814 = vmatpush3.bf16.msra.mxu0 %v904_v49 }
  0x68   :  { %815 = vmatprep.subr.bf16.mxu0 %v905_v50 }
  0x69   :  { %845 = vmatpush3.bf16.msra.mxu1 %v915_v1 }
  0x6a   :  { %846 = vmatprep.subr.bf16.mxu1 %v994_v61 }
  0x6b   :  { %816 = vmatpush3.bf16.msra.mxu0 %v906_v52 }
  0x6c   :  { %817 = vmatprep.subr.bf16.mxu0 %v907_v54 }
  0x6d   :  { %847 = vmatpush3.bf16.msra.mxu1 %v916_v2 }
  0x6e   :  { %848 = vmatprep.subr.bf16.mxu1 %v994_v61 }
  0x6f   :  { %818 = vmatpush3.bf16.msra.mxu0 %v908_v55 }
  0x70   :  { %819 = vmatprep.subr.bf16.mxu0 %v909_v56 }
  0x71   :  { %849 = vmatpush3.bf16.msra.mxu1 %v917_v3 }
  0x72   :  { %850 = vmatprep.subr.bf16.mxu1 %v994_v61 }
  0x73   :  { %820 = vmatpush3.bf16.msra.mxu0 %v910_v57 }
  0x75   :  { %851 = vmatpush3.bf16.msra.mxu1 %v918_v4 }
  0x76   :  { %576 = vmatmul.mubr.bf16.vlgmr.msra.gmra.mrb[4].mxu0 %v70_v59 }
 0x129   :  { %v777_v5 = vpop.f32.mrb[0].mxu0 }
 0x12a   :  { %v778_v7 = vpop.f32.mrb[1].mxu0 }
 0x12b   :  { %v779_v8 = vadd.f32 %v778_v7, %v777_v5  ;;  %v780_v9 = vpop.f32.mrb[2].mxu0  ;;  %v799_v10 = vpop.f32.mrb[0].mxu1 }
 0x12c   :  { %v781_v11 = vpop.f32.mrb[3].mxu0  ;;  %v800_v13 = vpop.f32.mrb[1].mxu1 }
 0x12d   :  { %v498_v12 = vadd.f32 %v779_v8, %v703_v6  ;;  %v801_v14 = vadd.f32 %v800_v13, %v799_v10  ;;  %v802_v15 = vpop.f32.mrb[2].mxu1 }
 0x12e   :  { %v803_v16 = vpop.f32.mrb[3].mxu1 }
 0x12f   :  { %v538_v17 = vadd.f32 %v801_v14, %v498_v12 }
 0x149   :  { %v821_v18 = vpop.f32.mrb[4].mxu0 }
 0x14a   :  { %v822_v19 = vpop.f32.mrb[5].mxu0 }
 0x14b   :  { %v823_v20 = vadd.f32 %v822_v19, %v821_v18  ;;  %v824_v21 = vpop.f32.mrb[6].mxu0 }
 0x14c   :  { %v825_v22 = vpop.f32.mrb[7].mxu0 }
 0x14d   :  { %v578_v23 = vadd.f32 %v823_v20, %v538_v17 }
 0x14f   :  { %v583_v24 = vmax.f32 %v578_v23, 0.0 }
 0x151   :  { %v584_v25 = vpack.c.bf16 %v583_v24, %v583_v24 }
 0x153   :  { %853 = vmatmul.mubr.bf16.vlgmr.msra.gmra.mrb[4].mxu1 %v584_v25 }
 0x226   :  { %v690_v27 = vpop.f32.mrb[4].mxu1 }
 0x227   :  { %v691_v28 = vadd.f32 %v752_v26, %v690_v27  ;;  %v854_v29 = vpop.f32.mrb[5].mxu1 }
 0x228   :  { %v693_v30 = vpop.f32.mrb[6].mxu1 }
 0x229   :  { %696 = vst [vmem:[%s1082_s5] sm:$0xff] %v691_v28  ;;  %v855_v31 = vpop.f32.mrb[7].mxu1 }
 0x22a   :  { %701 = vsyncpa [#allocation3], 1 }
 0x22b   :  { %702 = vsyncpa [#allocation5], 1 }

</bundles_post_ra>
